<compile_context>
chip_gen: v7x
topology: tpu7x:2x2x1
jax: 0.10.0
libtpu: 0.0.40
codegen_flags: <defaults>
</compile_context>

<pallas_src>
import functools
import math

import jax
import jax.numpy as jnp
from jax.experimental import pallas as pl
from jax.experimental.pallas import tpu as pltpu


def _chip_params():
    """Returns (input_vmem_budget, vmem_limit_bytes, num_tensorcores)."""
    vmem_cap = 128 * 1024 * 1024
    try:
        info = pltpu.get_tpu_info()
        vmem_cap = int(getattr(info, "vmem_capacity_bytes", vmem_cap))
    except Exception:
        pass
    is_v7 = False
    num_cores = 1
    try:
        kind = jax.devices()[0].device_kind.lower()
        is_v7 = "v7" in kind
        if is_v7:
            num_cores = 2            # v7x: 2 TensorCores per chip
    except Exception:
        pass
    if is_v7 or vmem_cap < 100 * 1024 * 1024:
        # v7x: only 64 MiB VMEM per TensorCore -- stay conservative.
        return 16 * 1024 * 1024, 40 * 1024 * 1024, num_cores
    # v5e / v6e: 128 MiB physical VMEM -- bigger tiles, fewer grid steps.
    return 32 * 1024 * 1024, 64 * 1024 * 1024, num_cores


# --------------------------------------------------------------------------
# Kernel: sublane-dense (N, tile_rows, L) tiles, fused f32 accumulators.
# --------------------------------------------------------------------------
def _dice_partials_kernel(x_ref, y_ref, acc_ref, *, rows_valid, tile_rows,
                          steps_per_chunk, first_masked_block, needs_mask):
    r = pl.program_id(1)

    @pl.when(r == 0)
    def _init():
        acc_ref[...] = jnp.zeros_like(acc_ref)

    x = x_ref[...].astype(jnp.float32)           # (N, tile_rows, L)
    y = y_ref[...].astype(jnp.float32)
    # sigmoid(x) == 0.5 * tanh(0.5 * x) + 0.5  : a single EUP transcendental.
    probs = 0.5 * jnp.tanh(0.5 * x) + 0.5

    def _accumulate(p_v, y_v):
        acc_ref[0, 0, :, :] += jnp.sum(p_v * y_v, axis=1)    # (N, L) inter
        acc_ref[0, 1, :, :] += jnp.sum(p_v, axis=1)          # (N, L) sum(probs)
        acc_ref[0, 2, :, :] += jnp.sum(y_v, axis=1)          # (N, L) sum(labels)

    if needs_mask:
        block = pl.program_id(0) * steps_per_chunk + r
        is_masked = block >= first_masked_block

        @pl.when(is_masked)
        def _ragged():
            # Ragged / phantom block: zero rows >= rows_valid.  OOB block padding
            # holds unspecified values, so select with where (never multiply).
            row0 = block * tile_rows
            row_ids = row0 + jax.lax.broadcasted_iota(jnp.int32, x.shape, 1)
            keep = row_ids < rows_valid
            _accumulate(jnp.where(keep, probs, 0.0), jnp.where(keep, y, 0.0))

        @pl.when(jnp.logical_not(is_masked))
        def _dense():
            _accumulate(probs, y)
    else:
        _accumulate(probs, y)


def _dice_rows_partials(x, y, n, d, max_rows_per_tile):
    """Streaming partial sums for (n, d) with d % 128 == 0.
    Returns (inter, psum, lsum): f32 vectors of length n."""
    lanes = 128
    for cand in (512, 256, 128):
        if d % cand == 0:
            lanes = cand
            break
    rows = d // lanes
    x3 = x.reshape(n, rows, lanes)
    y3 = y.reshape(n, rows, lanes)

    input_budget, vmem_limit, n_cores = _chip_params()

    # Keep narrow-dtype streams packed: 32-row tile quantum for sub-32-bit inputs.
    row_quant = 32 if min(x.dtype.itemsize, y.dtype.itemsize) < 4 else 8
    bytes_per_row = n * lanes * (x.dtype.itemsize + y.dtype.itemsize)
    max_rows = (input_budget // (2 * bytes_per_row)) // row_quant * row_quant
    max_rows = max(row_quant, min(max_rows, max_rows_per_tile))

    tile_rows = rows if rows <= max_rows else max_rows       # full extent OK if < 8
    total_blocks = -(-rows // tile_rows)

    # 2-way TensorCore ceil-split only on 2-TC chips (v7x); any phantom trailing
    # block is clamped to the last real block and zeroed by the mask.
    n_par = 2 if (n_cores >= 2 and total_blocks >= 2) else 1
    steps = -(-total_blocks // n_par)
    ragged = (rows % tile_rows) != 0
    phantom = (n_par * steps) > total_blocks
    needs_mask = ragged or phantom
    first_masked_block = (total_blocks - 1) if ragged else total_blocks
    last_block = total_blocks - 1

    kernel = functools.partial(
        _dice_partials_kernel,
        rows_valid=rows, tile_rows=tile_rows, steps_per_chunk=steps,
        first_masked_block=first_masked_block, needs_mask=needs_mask)

    in_spec = pl.BlockSpec(
        (n, tile_rows, lanes),
        lambda p, r: (0, jnp.minimum(p * steps + r, last_block), 0))
    out_spec = pl.BlockSpec((1, 3, n, lanes), lambda p, r: (p, 0, 0, 0))

    cost = pl.CostEstimate(
        flops=int(5 * n * d),
        transcendentals=int(n * d),
        bytes_accessed=int(x.nbytes + y.nbytes + 3 * n_par * n * lanes * 4))

    acc = pl.pallas_call(
        kernel,
        out_shape=jax.ShapeDtypeStruct((n_par, 3, n, lanes), jnp.float32),
        grid_spec=pltpu.PrefetchScalarGridSpec(
            num_scalar_prefetch=0,
            grid=(n_par, steps),
            in_specs=[in_spec, in_spec],
            out_specs=out_spec,
        ),
        compiler_params=pltpu.CompilerParams(
            dimension_semantics=("parallel", "arbitrary"),
            vmem_limit_bytes=vmem_limit),
        cost_estimate=cost,
    )(x3, y3)

    part = acc.sum(axis=(0, 3))                  # (3, n): chunk + cross-lane reduce
    return part[0], part[1], part[2]


# --------------------------------------------------------------------------
# Public wrapper (matches SoftDiceLoss.forward semantics).
# --------------------------------------------------------------------------
def soft_dice_loss(logits, labels, *, max_rows_per_tile=2048):
    """logits, labels: same shape, batch-first (e.g. NCHW).  Labels may be any
    numeric dtype (f32/bf16/int8); no wrapper-side upcast of the HBM stream.
    Returns an f32 scalar."""
    n = logits.shape[0]
    d = math.prod(logits.shape[1:])
    x = logits.reshape(n, d)
    y = labels.reshape(n, d)
    if y.dtype == jnp.bool_:
        y = y.astype(jnp.int8)

    d_main = (d // 128) * 128
    if d_main > 0:
        inter, psum, lsum = _dice_rows_partials(
            x[:, :d_main], y[:, :d_main], n, d_main, max_rows_per_tile)
    else:
        inter = jnp.zeros((n,), jnp.float32)
        psum = jnp.zeros((n,), jnp.float32)
        lsum = jnp.zeros((n,), jnp.float32)

    if d_main < d:
        # <128-column remainder: negligible bytes, handled in plain JAX.
        xr = x[:, d_main:].astype(jnp.float32)
        yr = y[:, d_main:].astype(jnp.float32)
        pr = jax.nn.sigmoid(xr)
        inter = inter + jnp.sum(pr * yr, axis=1)
        psum = psum + jnp.sum(pr, axis=1)
        lsum = lsum + jnp.sum(yr, axis=1)

    score = (2.0 * inter + 1.0) / (psum + lsum + 1.0)
    return (1.0 - jnp.sum(score) / n).astype(jnp.float32)


def _reference(logits, labels):
    probs = jax.nn.sigmoid(logits.astype(jnp.float32))
    n = labels.shape[0]
    m1 = probs.reshape(n, -1)
    m2 = labels.astype(jnp.float32).reshape(n, -1)
    inter = (m1 * m2).sum(axis=1)
    score = (2.0 * inter + 1.0) / (m1.sum(axis=1) + m2.sum(axis=1) + 1.0)
    return 1.0 - score.sum() / n


if __name__ == "__main__":
    key = jax.random.PRNGKey(0)

    def _check(loss, logits, labels, tag):
        jax.block_until_ready(loss)
        ref = _reference(logits, labels)
        assert jnp.allclose(loss, ref, atol=1e-5, rtol=1e-5), (tag, loss, ref)

    # 1) Main case: NCHW = (2, 4, 16, 16), D = 1024 -> single dense tile.
    k1, k2 = jax.random.split(key)
    logits = jax.random.normal(k1, (2, 4, 16, 16), dtype=jnp.float32)
    labels = (jax.random.uniform(k2, (2, 4, 16, 16)) > 0.5).astype(jnp.float32)
    _check(soft_dice_loss(logits, labels), logits, labels, "base")

    # 2) Multi-block reduction + ragged last-block mask (+ 2-way core split on v7x):
    #    D = 14336 -> 28 rows of 512; cap tiles at 8 rows -> 4 blocks, last ragged.
    k3, k4 = jax.random.split(k1)
    logits2 = jax.random.normal(k3, (2, 14, 32, 32), dtype=jnp.float32)
    labels2 = (jax.random.uniform(k4, (2, 14, 32, 32)) > 0.5).astype(jnp.float32)
    _check(soft_dice_loss(logits2, labels2, max_rows_per_tile=8),
           logits2, labels2, "ragged")

    # 3) D % 128 != 0 (D = 192): 128 columns through the dense kernel,
    #    64-column remainder folded in via plain JAX.
    k5, k6 = jax.random.split(k2)
    logits3 = jax.random.normal(k5, (2, 3, 8, 8), dtype=jnp.float32)
    labels3 = (jax.random.uniform(k6, (2, 3, 8, 8)) > 0.5).astype(jnp.float32)
    _check(soft_dice_loss(logits3, labels3), logits3, labels3, "remainder")

    # 4) Narrow dtypes (bf16 logits + bf16 binary labels): exercises the 32-row
    #    tile quantum and the in-kernel upcast; halves HBM traffic in real use.
    k7, k8 = jax.random.split(k3)
    logits4 = jax.random.normal(k7, (2, 8, 32, 32), dtype=jnp.bfloat16)
    labels4 = (jax.random.uniform(k8, (2, 8, 32, 32)) > 0.5).astype(jnp.bfloat16)
    _check(soft_dice_loss(logits4, labels4), logits4, labels4, "narrow")

    print("KERNEL_OK")
</pallas_src>

<mosaic_0001>
module attributes {stable_mosaic.version = 11 : i64} {
  func.func @_dice_partials_kernel(%arg0: i32, %arg1: i32, %arg2: memref<2x2x512xf32, #tpu.memory_space<vmem>>, %arg3: memref<2x2x512xf32, #tpu.memory_space<vmem>>, %arg4: memref<1x3x2x512xf32, #tpu.memory_space<vmem>>) attributes {dimension_semantics = [#tpu.dimension_semantics<parallel>, #tpu.dimension_semantics<arbitrary>], iteration_bounds = array<i64: 1, 1>, scalar_prefetch = 0 : i64, scratch_operands = 0 : i64, tpu.core_type = #tpu.core_type<tc>, window_params = [{transform_indices = @transform_0, window_bounds = array<i64: 2, 2, 512>}, {transform_indices = @transform_1, window_bounds = array<i64: 2, 2, 512>}, {transform_indices = @transform_2, window_bounds = array<i64: 1, 3, 2, 512>}]} {
    %c0_i32 = arith.constant 0 : i32
    %0 = arith.cmpi eq, %arg1, %c0_i32 : i32
    %1 = arith.extui %0 : i1 to i32
    %c0_i32_0 = arith.constant 0 : i32
    %2 = arith.cmpi ne, %1, %c0_i32_0 : i32
    scf.if %2 {
      %cst_33 = arith.constant 0.000000e+00 : f32
      %34 = vector.broadcast %cst_33 : f32 to vector<1x3x2x512xf32>
      %c0_34 = arith.constant 0 : index
      %c0_35 = arith.constant 0 : index
      %c0_36 = arith.constant 0 : index
      %c0_37 = arith.constant 0 : index
      %35 = vector.load %arg4[%c0_34, %c0_35, %c0_36, %c0_37] : memref<1x3x2x512xf32, #tpu.memory_space<vmem>>, vector<1x3x2x512xf32>
      tpu.vector_store %arg4[%c0_34, %c0_35, %c0_36, %c0_37], %34 {strides = array<i32>} : memref<1x3x2x512xf32, #tpu.memory_space<vmem>>, vector<1x3x2x512xf32>,
    } else {
    }
    %c0 = arith.constant 0 : index
    %c0_1 = arith.constant 0 : index
    %c0_2 = arith.constant 0 : index
    %3 = vector.load %arg2[%c0, %c0_1, %c0_2] : memref<2x2x512xf32, #tpu.memory_space<vmem>>, vector<2x2x512xf32>
    %c0_3 = arith.constant 0 : index
    %c0_4 = arith.constant 0 : index
    %c0_5 = arith.constant 0 : index
    %4 = vector.load %arg3[%c0_3, %c0_4, %c0_5] : memref<2x2x512xf32, #tpu.memory_space<vmem>>, vector<2x2x512xf32>
    %cst = arith.constant 5.000000e-01 : f32
    %5 = vector.broadcast %cst : f32 to vector<2x2x512xf32>
    %6 = arith.mulf %5, %3 : vector<2x2x512xf32>
    %7 = math.tanh %6 : vector<2x2x512xf32>
    %cst_6 = arith.constant 5.000000e-01 : f32
    %8 = vector.broadcast %cst_6 : f32 to vector<2x2x512xf32>
    %9 = arith.mulf %8, %7 : vector<2x2x512xf32>
    %cst_7 = arith.constant 5.000000e-01 : f32
    %10 = vector.broadcast %cst_7 : f32 to vector<2x2x512xf32>
    %11 = arith.addf %9, %10 : vector<2x2x512xf32>
    %c0_8 = arith.constant 0 : index
    %c0_9 = arith.constant 0 : index
    %c0_10 = arith.constant 0 : index
    %c0_11 = arith.constant 0 : index
    %12 = vector.load %arg4[%c0_8, %c0_9, %c0_10, %c0_11] : memref<1x3x2x512xf32, #tpu.memory_space<vmem>>, vector<1x1x2x512xf32>
    %13 = vector.shape_cast %12 : vector<1x1x2x512xf32> to vector<2x512xf32>
    %14 = arith.mulf %11, %4 : vector<2x2x512xf32>
    %cst_12 = arith.constant dense<0.000000e+00> : vector<2x512xf32>
    %15 = vector.multi_reduction <add>, %14, %cst_12 [1] : vector<2x2x512xf32> to vector<2x512xf32>
    %16 = arith.addf %13, %15 : vector<2x512xf32>
    %c0_13 = arith.constant 0 : index
    %c0_14 = arith.constant 0 : index
    %c0_15 = arith.constant 0 : index
    %c0_16 = arith.constant 0 : index
    %17 = vector.load %arg4[%c0_13, %c0_14, %c0_15, %c0_16] : memref<1x3x2x512xf32, #tpu.memory_space<vmem>>, vector<1x1x2x512xf32>
    %18 = vector.shape_cast %17 : vector<1x1x2x512xf32> to vector<2x512xf32>
    %19 = vector.shape_cast %16 : vector<2x512xf32> to vector<1x1x2x512xf32>
    tpu.vector_store %arg4[%c0_13, %c0_14, %c0_15, %c0_16], %19 {strides = array<i32>} : memref<1x3x2x512xf32, #tpu.memory_space<vmem>>, vector<1x1x2x512xf32>,
    %c0_17 = arith.constant 0 : index
    %c1 = arith.constant 1 : index
    %c0_18 = arith.constant 0 : index
    %c0_19 = arith.constant 0 : index
    %20 = vector.load %arg4[%c0_17, %c1, %c0_18, %c0_19] : memref<1x3x2x512xf32, #tpu.memory_space<vmem>>, vector<1x1x2x512xf32>
    %21 = vector.shape_cast %20 : vector<1x1x2x512xf32> to vector<2x512xf32>
    %cst_20 = arith.constant dense<0.000000e+00> : vector<2x512xf32>
    %22 = vector.multi_reduction <add>, %11, %cst_20 [1] : vector<2x2x512xf32> to vector<2x512xf32>
    %23 = arith.addf %21, %22 : vector<2x512xf32>
    %c0_21 = arith.constant 0 : index
    %c1_22 = arith.constant 1 : index
    %c0_23 = arith.constant 0 : index
    %c0_24 = arith.constant 0 : index
    %24 = vector.load %arg4[%c0_21, %c1_22, %c0_23, %c0_24] : memref<1x3x2x512xf32, #tpu.memory_space<vmem>>, vector<1x1x2x512xf32>
    %25 = vector.shape_cast %24 : vector<1x1x2x512xf32> to vector<2x512xf32>
    %26 = vector.shape_cast %23 : vector<2x512xf32> to vector<1x1x2x512xf32>
    tpu.vector_store %arg4[%c0_21, %c1_22, %c0_23, %c0_24], %26 {strides = array<i32>} : memref<1x3x2x512xf32, #tpu.memory_space<vmem>>, vector<1x1x2x512xf32>,
    %c0_25 = arith.constant 0 : index
    %c2 = arith.constant 2 : index
    %c0_26 = arith.constant 0 : index
    %c0_27 = arith.constant 0 : index
    %27 = vector.load %arg4[%c0_25, %c2, %c0_26, %c0_27] : memref<1x3x2x512xf32, #tpu.memory_space<vmem>>, vector<1x1x2x512xf32>
    %28 = vector.shape_cast %27 : vector<1x1x2x512xf32> to vector<2x512xf32>
    %cst_28 = arith.constant dense<0.000000e+00> : vector<2x512xf32>
    %29 = vector.multi_reduction <add>, %4, %cst_28 [1] : vector<2x2x512xf32> to vector<2x512xf32>
    %30 = arith.addf %28, %29 : vector<2x512xf32>
    %c0_29 = arith.constant 0 : index
    %c2_30 = arith.constant 2 : index
    %c0_31 = arith.constant 0 : index
    %c0_32 = arith.constant 0 : index
    %31 = vector.load %arg4[%c0_29, %c2_30, %c0_31, %c0_32] : memref<1x3x2x512xf32, #tpu.memory_space<vmem>>, vector<1x1x2x512xf32>
    %32 = vector.shape_cast %31 : vector<1x1x2x512xf32> to vector<2x512xf32>
    %33 = vector.shape_cast %30 : vector<2x512xf32> to vector<1x1x2x512xf32>
    tpu.vector_store %arg4[%c0_29, %c2_30, %c0_31, %c0_32], %33 {strides = array<i32>} : memref<1x3x2x512xf32, #tpu.memory_space<vmem>>, vector<1x1x2x512xf32>,
    return
  }
  func.func @transform_0(%arg0: i32, %arg1: i32) -> (i32, i32, i32) {
    %c1_i32 = arith.constant 1 : i32
    %0 = arith.muli %arg0, %c1_i32 : i32
    %1 = arith.addi %0, %arg1 : i32
    %c0_i32 = arith.constant 0 : i32
    %2 = arith.minsi %1, %c0_i32 : i32
    %c0_i32_0 = arith.constant 0 : i32
    %c0_i32_1 = arith.constant 0 : i32
    %c0_i32_2 = arith.constant 0 : i32
    return %c0_i32_0, %2, %c0_i32_1 : i32, i32, i32
  }
  func.func @transform_1(%arg0: i32, %arg1: i32) -> (i32, i32, i32) {
    %c1_i32 = arith.constant 1 : i32
    %0 = arith.muli %arg0, %c1_i32 : i32
    %1 = arith.addi %0, %arg1 : i32
    %c0_i32 = arith.constant 0 : i32
    %2 = arith.minsi %1, %c0_i32 : i32
    %c0_i32_0 = arith.constant 0 : i32
    %c0_i32_1 = arith.constant 0 : i32
    %c0_i32_2 = arith.constant 0 : i32
    return %c0_i32_0, %2, %c0_i32_1 : i32, i32, i32
  }
  func.func @transform_2(%arg0: i32, %arg1: i32) -> (i32, i32, i32, i32) {
    %c0_i32 = arith.constant 0 : i32
    %c0_i32_0 = arith.constant 0 : i32
    %c0_i32_1 = arith.constant 0 : i32
    %c0_i32_2 = arith.constant 0 : i32
    return %arg0, %c0_i32, %c0_i32_0, %c0_i32_1 : i32, i32, i32, i32
  }
}

</mosaic_0001>

<bundles_post_ra>
// kernel: tpu_custom_call.1
= control target key start
LH: loop header
LB: loop body
LE: loop exit
PB: predicated region body
PF: predicated region fallthrough
CT: control target
= control target key end

     0   :  { %7 = vsyncpa [#allocation3], 0  ;;  %s853_s0 = inlined_call_operand.hbm [shape: f32[2,2,512], index: 0, kind: input, shape index: {}]   ;;  %s854_s1 = inlined_call_operand.hbm [shape: f32[2,2,512], index: 1, kind: input, shape index: {}]   ;;  %s855_s2 = inlined_call_operand.hbm [shape: f32[1,3,2,512], index: 2, kind: output, shape index: {}]  }
   0x1   :  { %8 = vsyncpa [#allocation6], 0 }
   0x2   :  { %9 = vsyncpa [#allocation4], 0  ;;  %s654_s9 = smov [#allocation2]   ;;  %s582_s13 = scalar_lea.hbm %s853_s0, 256 }
   0x3   :  { %s21_s10 = sshll.u32 %s654_s9, 4  ;;  %p583_p0 = scmp.ne.s32.totalorder %s853_s0, %s582_s13  ;;  %s22_s10 = int_to_ptr.vmem [resolvable:$true] %s21_s10 }
   0x4   :  { %p586_p1 = scmp.lt.u32.totalorder %s582_s13, %s853_s0 }
   0x6   :  { %p588_p2 = pnand %p586_p1, %p583_p0 }
   0x8   :  { %591 = shalt.err (!%p588_p2)
}
   0x9   :  { %s592_s18 = scalar_lea.vmem %s22_s10, 256  ;;  %p597_p4 = scmp.lt.s32.totalorder %s22_s10, %s22_s10 }
   0xa   :  { %p593_p3 = scmp.ne.s32.totalorder %s22_s10, %s592_s18  ;;  %p598_p5 = scmp.lt.s32.totalorder %s592_s18, %s592_s18 }
   0xc   :  { %p599_p6 = por %p598_p5, %p597_p4 }
   0xe   :  { %p600_p7 = pnand %p599_p6, %p593_p3 }
  0x10   :  { %603 = shalt.err (!%p600_p7)
}
  0x11   :  { %s655_s19 = smov 128   ;;  %s656_s20 = smov 8  }
  0x12   :  { %27 = dma.hbm_to_vmem [thread:$0]  %s853_s0, 256, %s22_s10, [#allocation3], %s655_s19, %s655_s19, %s656_s20  }
  0x13   :  { %s657_s23 = smov [#allocation5]   ;;  %s604_s27 = scalar_lea.hbm %s854_s1, 256 }
  0x14   :  { %s39_s24 = sshll.u32 %s657_s23, 4  ;;  %p605_p8 = scmp.ne.s32.totalorder %s854_s1, %s604_s27  ;;  %s40_s24 = int_to_ptr.vmem [resolvable:$true] %s39_s24 }
  0x15   :  { %p608_p9 = scmp.lt.u32.totalorder %s604_s27, %s854_s1 }
  0x17   :  { %p610_p10 = pnand %p608_p9, %p605_p8 }
  0x19   :  { %613 = shalt.err (!%p610_p10)
}
  0x1a   :  { %s614_s4 = scalar_lea.vmem %s40_s24, 256  ;;  %p619_p12 = scmp.lt.s32.totalorder %s40_s24, %s40_s24 }
  0x1b   :  { %p615_p11 = scmp.ne.s32.totalorder %s40_s24, %s614_s4  ;;  %p620_p13 = scmp.lt.s32.totalorder %s614_s4, %s614_s4 }
  0x1d   :  { %p621_p0 = por %p620_p13, %p619_p12 }
  0x1f   :  { %p622_p1 = pnand %p621_p0, %p615_p11 }
  0x21   :  { %625 = shalt.err (!%p622_p1)
}
  0x22   :  { %45 = dma.hbm_to_vmem [thread:$0]  %s854_s1, 256, %s40_s24, [#allocation6], %s655_s19, %s655_s19, %s656_s20  }
  0x23   :  { %648 = dma.done.wait [#allocation3], 256  }
  0x24   :  { %649 = vsyncadd [#allocation3], 4294967040 }
  0x25   :  { %650 = dma.done.wait [#allocation6], 256  }
  0x26   :  { %651 = vsyncadd [#allocation6], 4294967040  ;;  %v86_v0 = vlaneseq  ;;  %v658_v1 = vmov 1983009808   ;;  %v65_v6 = vld [vmem:[#allocation2] sm:$0xff]  ;;  %v66_v7 = vld [vmem:[#allocation2 + $0x8] sm:$0xff] }
  0x27   :  { %v84_v2 = vunpack.c.l.s4 %v658_v1  ;;  %v707_v8 = vld [vmem:[#allocation5] sm:$0xff]  ;;  %v709_v9 = vld [vmem:[#allocation5 + $0x8] sm:$0xff]  ;;  %v69_v10 = vmul.f32 0.5, %v65_v6  ;;  %v70_v11 = vmul.f32 0.5, %v66_v7  ;;  %vm124_vm0 = vcmask 1041408   ;;  %s659_s1 = smov [#allocation7]  }
  0x28   :  { %v87_v3 = vshrl.u32 %v86_v0, 7  ;;  %v397_v12 = vcombine.high %v707_v8, %v707_v8  ;;  %v414_v14 = vcombine.high %v709_v9, %v709_v9  ;;  %vm228_vm1 = vcmask 1041409   ;;  %s552_s6 = sshll.u32 %s659_s1, 4  ;;  %s553_s6 = int_to_ptr.vmem [resolvable:$true] %s552_s6 }
  0x29   :  { %v85_v4 = vunpack.c.0.s8 %v84_v2  ;;  %578 = vtanh.f32 %v69_v10  ;;  %vm230_vm2 = vcmask 1043459   ;;  %vm232_vm3 = vcmask 1045509   ;;  %s626_s7 = scalar_lea.vmem %s553_s6, 384  ;;  %p631_p3 = scmp.lt.s32.totalorder %s553_s6, %s553_s6 }
  0x2a   :  { %580 = vtanh.f32 %v70_v11  ;;  %vm234_vm4 = vcmask 1047559   ;;  %p627_p2 = scmp.ne.s32.totalorder %s553_s6, %s626_s7  ;;  %p632_p4 = scmp.lt.s32.totalorder %s626_s7, %s626_s7 }
  0x2b   :  { %v705_v5 = vsub.s32 %v85_v4, %v87_v3 }
  0x2c   :  { %p633_p5 = por %p632_p4, %p631_p3 }
  0x2d   :  { %v404_v13 = vrot.slane %v707_v8, %v705_v5  ;;  %v421_v15 = vrot.slane %v709_v9, %v705_v5  ;;  %v411_v16 = vrot.slane %v397_v12, %v705_v5  ;;  %v428_v19 = vrot.slane %v414_v14, %v705_v5 }
  0x2e   :  { %p634_p6 = pnand %p633_p5, %p627_p2 }
  0x2f   :  { %v412_v17 = vcombine.high %v404_v13, %v404_v13  ;;  %v439_v18 = vsel %vm124_vm0, %v404_v13, 0.0  ;;  %v429_v20 = vcombine.high %v421_v15, %v421_v15  ;;  %v413_v22 = vcombine.high %v411_v16, %v411_v16 }
  0x30   :  { %v440_v21 = vrot.slane %v439_v18, 4  ;;  %v453_v24 = vsel %vm124_vm0, %v411_v16, 0.0  ;;  %v467_v25 = vsel %vm124_vm0, %v421_v15, 0.0  ;;  %v430_v26 = vcombine.high %v428_v19, %v428_v19 }
  0x31   :  { %v446_v23 = vsel %vm124_vm0, %v412_v17, 0.0  ;;  %v454_v29 = vrot.slane %v453_v24, 4  ;;  %v460_v30 = vsel %vm124_vm0, %v413_v22, 0.0  ;;  %v468_v31 = vrot.slane %v467_v25, 4 }
  0x32   :  { %v441_v27 = vadd.f32 %v440_v21, %v439_v18  ;;  %v447_v28 = vrot.slane %v446_v23, 4  ;;  %v474_v32 = vsel %vm124_vm0, %v429_v20, 0.0  ;;  %v481_v33 = vsel %vm124_vm0, %v428_v19, 0.0 }
  0x33   :  { %v455_v36 = vadd.f32 %v454_v29, %v453_v24  ;;  %v461_v37 = vrot.slane %v460_v30, 4  ;;  %v469_v38 = vadd.f32 %v468_v31, %v467_v25  ;;  %v475_v39 = vrot.slane %v474_v32, 4  ;;  %v579_v54 = vpop.eup %578 }
  0x34   :  { %v442_v34 = vrot.slane %v441_v27, 2  ;;  %v448_v35 = vadd.f32 %v447_v28, %v446_v23  ;;  %v482_v40 = vrot.slane %v481_v33, 4  ;;  %v488_v41 = vsel %vm124_vm0, %v430_v26, 0.0  ;;  %v581_v57 = vpop.eup %580 }
  0x35   :  { %v456_v44 = vrot.slane %v455_v36, 2  ;;  %v462_v45 = vadd.f32 %v461_v37, %v460_v30  ;;  %v470_v46 = vrot.slane %v469_v38, 2  ;;  %v476_v47 = vadd.f32 %v475_v39, %v474_v32 }
  0x36   :  { %v443_v42 = vadd.f32 %v442_v34, %v441_v27  ;;  %v449_v43 = vrot.slane %v448_v35, 2  ;;  %v483_v48 = vadd.f32 %v482_v40, %v481_v33  ;;  %v489_v49 = vrot.slane %v488_v41, 4 }
  0x37   :  { %v457_v52 = vadd.f32 %v456_v44, %v455_v36  ;;  %v463_v53 = vrot.slane %v462_v45, 2  ;;  %v729_v55 = vadd.f32 %v470_v46, %v469_v38  ;;  %v477_v56 = vrot.slane %v476_v47, 2 }
  0x38   :  { %v444_v50 = vrot.slane %v443_v42, 1  ;;  %v450_v51 = vadd.f32 %v449_v43, %v448_v35  ;;  %v73_v58 = vmul.f32 0.5, %v579_v54  ;;  %v74_v61 = vmul.f32 0.5, %v581_v57 }
  0x39   :  { %v458_v60 = vrot.slane %v457_v52, 1  ;;  %v484_v62 = vrot.slane %v483_v48, 2  ;;  %v733_v1 = vadd.f32 %v463_v53, %v462_v45  ;;  %v735_v2 = vadd.f32 %v489_v49, %v488_v41 }
  0x3a   :  { %v451_v59 = vrot.slane %v450_v51, 1  ;;  %v75_v63 = vadd.f32 0.5, %v73_v58  ;;  %v731_v0 = vadd.f32 %v444_v50, %v443_v42  ;;  %v76_v3 = vadd.f32 0.5, %v74_v61 }
  0x3b   :  { %v472_v6 = vrot.slane %v729_v55, 1  ;;  %v740_v7 = vadd.f32 %v477_v56, %v476_v47  ;;  %v746_v13 = vadd.f32 %v458_v60, %v457_v52  ;;  %v752_v17 = vadd.f32 %v484_v62, %v483_v48 }
  0x3c   :  { %v737_v4 = vadd.f32 %v451_v59, %v450_v51  ;;  %v78_v10 = vmul.f32 %v75_v63, %v707_v8  ;;  %v243_v11 = vcombine.high %v75_v63, %v75_v63  ;;  %v744_v12 = vrot.slane %v75_v63, %v705_v5 }
  0x3d   :  { %v79_v14 = vmul.f32 %v76_v3, %v709_v9  ;;  %v260_v15 = vcombine.high %v76_v3, %v76_v3  ;;  %v750_v16 = vrot.slane %v76_v3, %v705_v5  ;;  %v465_v8 = vrot.slane %v733_v1, 1 }
  0x3e   :  { %v82_v18 = vcombine.high %v78_v10, %v78_v10  ;;  %v89_v19 = vrot.slane %v78_v10, %v705_v5  ;;  %v756_v20 = vrot.slane %v243_v11, %v705_v5  ;;  %v258_v9 = vcombine.high %v744_v12, %v744_v12 }
  0x3f   :  { %v99_v21 = vcombine.high %v79_v14, %v79_v14  ;;  %v106_v22 = vrot.slane %v79_v14, %v705_v5  ;;  %v763_v23 = vrot.slane %v260_v15, %v705_v5  ;;  %v275_v27 = vcombine.high %v750_v16, %v750_v16 }
  0x40   :  { %v96_v24 = vrot.slane %v82_v18, %v705_v5  ;;  %v97_v25 = vcombine.high %v89_v19, %v89_v19  ;;  %v125_v26 = vsel %vm124_vm0, %v89_v19, 0.0 }
  0x41   :  { %v113_v28 = vrot.slane %v99_v21, %v705_v5  ;;  %v114_v29 = vcombine.high %v106_v22, %v106_v22  ;;  %v126_v30 = vrot.slane %v125_v26, 4  ;;  %v153_v31 = vsel %vm124_vm0, %v106_v22, 0.0 }
  0x42   :  { %v98_v32 = vcombine.high %v96_v24, %v96_v24  ;;  %v132_v33 = vsel %vm124_vm0, %v97_v25, 0.0  ;;  %v139_v34 = vsel %vm124_vm0, %v96_v24, 0.0  ;;  %v154_v35 = vrot.slane %v153_v31, 4 }
  0x43   :  { %v115_v36 = vcombine.high %v113_v28, %v113_v28  ;;  %v127_v37 = vadd.f32 %v126_v30, %v125_v26  ;;  %v133_v38 = vrot.slane %v132_v33, 4  ;;  %v140_v39 = vrot.slane %v139_v34, 4 }
  0x44   :  { %v146_v40 = vsel %vm124_vm0, %v98_v32, 0.0  ;;  %v155_v41 = vadd.f32 %v154_v35, %v153_v31  ;;  %v160_v42 = vsel %vm124_vm0, %v114_v29, 0.0  ;;  %v167_v43 = vsel %vm124_vm0, %v113_v28, 0.0 }
  0x45   :  { %v128_v44 = vrot.slane %v127_v37, 2  ;;  %v134_v45 = vadd.f32 %v133_v38, %v132_v33  ;;  %v141_v46 = vadd.f32 %v140_v39, %v139_v34  ;;  %v147_v47 = vrot.slane %v146_v40, 4 }
  0x46   :  { %v156_v48 = vrot.slane %v155_v41, 2  ;;  %v161_v49 = vrot.slane %v160_v42, 4  ;;  %v168_v50 = vrot.slane %v167_v43, 4  ;;  %v174_v51 = vsel %vm124_vm0, %v115_v36, 0.0 }
  0x47   :  { %v129_v52 = vadd.f32 %v128_v44, %v127_v37  ;;  %v135_v53 = vrot.slane %v134_v45, 2  ;;  %v142_v54 = vrot.slane %v141_v46, 2  ;;  %v148_v56 = vadd.f32 %v147_v47, %v146_v40 }
  0x48   :  { %v157_v57 = vadd.f32 %v156_v48, %v155_v41  ;;  %v162_v58 = vadd.f32 %v161_v49, %v160_v42  ;;  %v169_v59 = vadd.f32 %v168_v50, %v167_v43  ;;  %v175_v60 = vrot.slane %v174_v51, 4 }
  0x49   :  { %v130_v61 = vrot.slane %v129_v52, 1  ;;  %v136_v62 = vadd.f32 %v135_v53, %v134_v45  ;;  %v143_v63 = vadd.f32 %v142_v54, %v141_v46  ;;  %v149_v3 = vrot.slane %v148_v56, 2 }
  0x4a   :  { %v158_v10 = vrot.slane %v157_v57, 1  ;;  %v163_v11 = vrot.slane %v162_v58, 2  ;;  %v170_v14 = vrot.slane %v169_v59, 2  ;;  %v176_v15 = vadd.f32 %v175_v60, %v174_v51 }
  0x4b   :  { %v131_v18 = vadd.f32 %v130_v61, %v129_v52  ;;  %v137_v19 = vrot.slane %v136_v62, 1  ;;  %v144_v21 = vrot.slane %v143_v63, 1  ;;  %v150_v22 = vadd.f32 %v149_v3, %v148_v56 }
  0x4c   :  { %v164_v24 = vadd.f32 %v163_v11, %v162_v58  ;;  %v171_v25 = vadd.f32 %v170_v14, %v169_v59  ;;  %v177_v26 = vrot.slane %v176_v15, 2  ;;  %v259_v28 = vcombine.high %v756_v20, %v756_v20 }
  0x4d   :  { %v138_v29 = vadd.f32 %v137_v19, %v136_v62  ;;  %v145_v30 = vadd.f32 %v144_v21, %v143_v63  ;;  %v151_v31 = vrot.slane %v150_v22, 1  ;;  %v159_v32 = vadd.f32 %v158_v10, %v157_v57 }
  0x4e   :  { %v165_v33 = vrot.slane %v164_v24, 1  ;;  %v172_v34 = vrot.slane %v171_v25, 1  ;;  %v178_v35 = vadd.f32 %v177_v26, %v176_v15  ;;  %v285_v36 = vsel %vm124_vm0, %v744_v12, 0.0 }
  0x4f   :  { %v152_v37 = vadd.f32 %v151_v31, %v150_v22  ;;  %v189_v38 = vcombine.low %v131_v18, %v138_v29  ;;  %v286_v39 = vrot.slane %v285_v36, 4  ;;  %v292_v40 = vsel %vm124_vm0, %v258_v9, 0.0 }
  0x50   :  { %v166_v41 = vadd.f32 %v165_v33, %v164_v24  ;;  %v173_v42 = vadd.f32 %v172_v34, %v171_v25  ;;  %v179_v43 = vrot.slane %v178_v35, 1  ;;  %v293_v44 = vrot.slane %v292_v40, 4 }
  0x51   :  { %v190_v45 = vcombine.low %v145_v30, %v152_v37  ;;  %v197_v46 = vrot.slane %v189_v38, %v705_v5  ;;  %v287_v47 = vadd.f32 %v286_v39, %v285_v36  ;;  %v299_v48 = vsel %vm124_vm0, %v756_v20, 0.0 }
  0x52   :  { %v180_v49 = vadd.f32 %v179_v43, %v178_v35  ;;  %v206_v50 = vcombine.low %v159_v32, %v166_v41  ;;  %v294_v51 = vadd.f32 %v293_v44, %v292_v40  ;;  %v300_v52 = vrot.slane %v299_v48, 4 }
  0x53   :  { %v204_v12 = vrot.slane %v190_v45, %v705_v5  ;;  %v288_v9 = vrot.slane %v287_v47, 2  ;;  %v306_v53 = vsel %vm124_vm0, %v259_v28, 0.0  ;;  %v313_v54 = vsel %vm124_vm0, %v750_v16, 0.0 }
  0x54   :  { %v207_v56 = vcombine.low %v173_v42, %v180_v49  ;;  %v214_v57 = vrot.slane %v206_v50, %v705_v5  ;;  %v295_v58 = vrot.slane %v294_v51, 2  ;;  %v301_v20 = vadd.f32 %v300_v52, %v299_v48 }
  0x55   :  { %v276_v59 = vcombine.high %v763_v23, %v763_v23  ;;  %v289_v60 = vadd.f32 %v288_v9, %v287_v47  ;;  %v307_v61 = vrot.slane %v306_v53, 4  ;;  %v314_v62 = vrot.slane %v313_v54, 4 }
  0x56   :  { %v221_v63 = vrot.slane %v207_v56, %v705_v5  ;;  %v296_v3 = vadd.f32 %v295_v58, %v294_v51  ;;  %v302_v10 = vrot.slane %v301_v20, 2  ;;  %v320_v11 = vsel %vm124_vm0, %v275_v27, 0.0 }
  0x57   :  { %v205_v14 = vcombine.low %v197_v46, %v204_v12  ;;  %v308_v15 = vadd.f32 %v307_v61, %v306_v53  ;;  %v315_v18 = vadd.f32 %v314_v62, %v313_v54  ;;  %v321_v19 = vrot.slane %v320_v11, 4 }
  0x58   :  { %v222_v21 = vcombine.low %v214_v57, %v221_v63  ;;  %v290_v22 = vrot.slane %v289_v60, 1  ;;  %v303_v24 = vadd.f32 %v302_v10, %v301_v20  ;;  %v327_v25 = vsel %vm124_vm0, %v763_v23, 0.0 }
  0x59   :  { %v309_v26 = vrot.slane %v308_v15, 2  ;;  %v316_v28 = vrot.slane %v315_v18, 2  ;;  %v322_v29 = vadd.f32 %v321_v19, %v320_v11  ;;  %v479_v30 = vrot.slane %v740_v7, 1 }
  0x5a   :  { %v227_v31 = vrot.slane %v222_v21, 7  ;;  %v297_v32 = vrot.slane %v296_v3, 1  ;;  %v304_v16 = vrot.slane %v303_v24, 1  ;;  %v328_v33 = vrot.slane %v327_v25, 4 }
  0x5b   :  { %v310_v27 = vadd.f32 %v309_v26, %v308_v15  ;;  %v317_v34 = vadd.f32 %v316_v28, %v315_v18  ;;  %v323_v35 = vrot.slane %v322_v29, 2  ;;  %v334_v36 = vsel %vm124_vm0, %v276_v59, 0.0 }
  0x5c   :  { %v229_v37 = vsel %vm228_vm1, %v227_v31, %v205_v14  ;;  %v291_v38 = vadd.f32 %v290_v22, %v289_v60  ;;  %v329_v39 = vadd.f32 %v328_v33, %v327_v25  ;;  %v335_v40 = vrot.slane %v334_v36, 4 }
  0x5d   :  { %v231_v23 = vsel %vm230_vm2, %v227_v31, %v229_v37  ;;  %v311_v41 = vrot.slane %v310_v27, 1  ;;  %v318_v42 = vrot.slane %v317_v34, 1  ;;  %v324_v43 = vadd.f32 %v323_v35, %v322_v29 }
  0x5e   :  { %v233_v44 = vsel %vm232_vm3, %v227_v31, %v231_v23  ;;  %v298_v45 = vadd.f32 %v297_v32, %v296_v3  ;;  %v330_v46 = vrot.slane %v329_v39, 2  ;;  %v336_v47 = vadd.f32 %v335_v40, %v334_v36 }
  0x5f   :  { %v235_v48 = vsel %vm234_vm4, %v227_v31, %v233_v44  ;;  %v305_v49 = vadd.f32 %v304_v16, %v303_v24  ;;  %v312_v50 = vadd.f32 %v311_v41, %v310_v27  ;;  %v325_v51 = vrot.slane %v324_v43, 1 }
  0x60   :  { %v319_v52 = vadd.f32 %v318_v42, %v317_v34  ;;  %v331_v12 = vadd.f32 %v330_v46, %v329_v39  ;;  %v337_v9 = vrot.slane %v336_v47, 2  ;;  %v466_v54 = vadd.f32 %v465_v8, %v733_v1  ;;  %238 = vst [vmem:[#allocation7] sm:$0xff] %v235_v48 }
  0x61   :  { %v326_v53 = vadd.f32 %v325_v51, %v324_v43  ;;  %v473_v56 = vadd.f32 %v472_v6, %v729_v55  ;;  %v486_v57 = vrot.slane %v752_v17, 1  ;;  %v480_v59 = vadd.f32 %v479_v30, %v740_v7 }
  0x62   :  { %v332_v58 = vrot.slane %v331_v12, 1  ;;  %v338_v20 = vadd.f32 %v337_v9, %v336_v47  ;;  %v491_v60 = vrot.slane %v735_v2, 2  ;;  %v349_v61 = vcombine.low %v291_v38, %v298_v45 }
  0x63   :  { %v350_v62 = vcombine.low %v305_v49, %v312_v50  ;;  %v366_v10 = vcombine.low %v319_v52, %v326_v53  ;;  %v487_v8 = vadd.f32 %v486_v57, %v752_v17  ;;  %v503_v55 = vcombine.low %v731_v0, %v737_v4 }
  0x64   :  { %v333_v63 = vadd.f32 %v332_v58, %v331_v12  ;;  %v339_v3 = vrot.slane %v338_v20, 1  ;;  %v492_v1 = vadd.f32 %v491_v60, %v735_v2  ;;  %v504_v14 = vcombine.low %v746_v13, %v466_v54 }
  0x65   :  { %v520_v15 = vcombine.low %v473_v56, %v480_v59  ;;  %v357_v7 = vrot.slane %v349_v61, %v705_v5  ;;  %v364_v18 = vrot.slane %v350_v62, %v705_v5  ;;  %v374_v21 = vrot.slane %v366_v10, %v705_v5 }
  0x66   :  { %v340_v6 = vadd.f32 %v339_v3, %v338_v20  ;;  %v493_v11 = vrot.slane %v492_v1, 1  ;;  %v511_v2 = vrot.slane %v503_v55, %v705_v5  ;;  %v518_v24 = vrot.slane %v504_v14, %v705_v5 }
  0x67   :  { %v528_v4 = vrot.slane %v520_v15, %v705_v5  ;;  %v365_v25 = vcombine.low %v357_v7, %v364_v18 }
  0x68   :  { %v367_v19 = vcombine.low %v333_v63, %v340_v6  ;;  %v494_v22 = vadd.f32 %v493_v11, %v492_v1  ;;  %v519_v29 = vcombine.low %v511_v2, %v518_v24 }
  0x6a   :  { %v381_v17 = vrot.slane %v367_v19, %v705_v5  ;;  %v521_v0 = vcombine.low %v487_v8, %v494_v22 }
  0x6c   :  { %v382_v13 = vcombine.low %v374_v21, %v381_v17  ;;  %v535_v26 = vrot.slane %v521_v0, %v705_v5 }
  0x6e   :  { %v385_v28 = vrot.slane %v382_v13, 7  ;;  %v536_v30 = vcombine.low %v528_v4, %v535_v26 }
  0x70   :  { %v386_v31 = vsel %vm228_vm1, %v385_v28, %v365_v25  ;;  %v539_v32 = vrot.slane %v536_v30, 7 }
  0x71   :  { %v387_v16 = vsel %vm230_vm2, %v385_v28, %v386_v31 }
  0x72   :  { %v388_v33 = vsel %vm232_vm3, %v385_v28, %v387_v16  ;;  %v540_v27 = vsel %vm228_vm1, %v539_v32, %v519_v29 }
  0x73   :  { %v389_v34 = vsel %vm234_vm4, %v385_v28, %v388_v33  ;;  %v541_v35 = vsel %vm230_vm2, %v539_v32, %v540_v27 }
  0x74   :  { %v542_v5 = vsel %vm232_vm3, %v539_v32, %v541_v35  ;;  %392 = vst [vmem:[#allocation7 + $0x8] sm:$0xff] %v389_v34 }
  0x75   :  { %v543_v36 = vsel %vm234_vm4, %v539_v32, %v542_v5 }
  0x76   :  { %546 = vst [vmem:[#allocation7 + $0x10] sm:$0xff] %v543_v36 }
  0x77   :  { %637 = shalt.err (!%p634_p6)
}
  0x78   :  { %s638_s10 = scalar_lea.hbm %s855_s2, 384 }
  0x79   :  { %p639_p7 = scmp.ne.s32.totalorder %s855_s2, %s638_s10  ;;  %p642_p8 = scmp.lt.u32.totalorder %s638_s10, %s855_s2 }
  0x7b   :  { %p644_p9 = pnand %p642_p8, %p639_p7 }
  0x7d   :  { %647 = shalt.err (!%p644_p9)
}
  0x7e   :  { %558 = dma.vmem_to_hbm [thread:$0]  %s553_s6, 384, %s855_s2, [#allocation4], %s655_s19, %s655_s19, %s656_s20  }
  0x7f   :  { %652 = dma.done.wait [#allocation4], 384  }
  0x80   :  { %653 = vsyncadd [#allocation4], 4294966912 }
  0x81   :  { %562 = vsyncpa [#allocation3], 1 }
  0x82   :  { %563 = vsyncpa [#allocation6], 1 }
  0x83   :  { %564 = vsyncpa [#allocation4], 1 }

</bundles_post_ra>
